<compile_context>
chip_gen: v5e
topology: v5e:2x2
jax: 0.10.0
libtpu: 0.0.40
codegen_flags: <defaults>
</compile_context>

<pallas_src>
import functools

import jax
import jax.numpy as jnp
from jax.experimental import pallas as pl
from jax.experimental.pallas import tpu as pltpu


def mlp_kernel(x_ref, w1_ref, b1_ref, w2_ref, b2_ref, w3_ref, b3_ref, o_ref):
    # x_ref: (4, TB)  -- batch on lanes, features on sublanes.
    x = x_ref[...]

    # Layer 1: (16,4) @ (4,TB) + (16,1) -> ReLU
    h1 = jnp.dot(w1_ref[...], x, preferred_element_type=jnp.float32)
    h1 = jnp.maximum(h1 + b1_ref[...], 0.0)

    # Layer 2: (8,16) @ (16,TB) + (8,1) -> ReLU
    h2 = jnp.dot(w2_ref[...], h1, preferred_element_type=jnp.float32)
    h2 = jnp.maximum(h2 + b2_ref[...], 0.0)

    # Layer 3: (2,8) @ (8,TB) + (2,1)   (no activation)
    h3 = jnp.dot(w3_ref[...], h2, preferred_element_type=jnp.float32)
    o_ref[...] = (h3 + b3_ref[...]).astype(o_ref.dtype)


def simple_nn_forward(x, params, *, tile_b=512):
    """x: [B, 4] float32.  params: PyTorch-native W [out,in], b [out,1].

    tile_b must be a multiple of 128 (batch sits on the lane axis).  For
    production-sized batches sweep 512-2048; smaller tiles are fine for tests.
    """
    assert tile_b % 128 == 0, "batch tile must be lane-aligned (multiple of 128)"
    B = x.shape[0]
    w1, b1 = params["w1"], params["b1"]
    w2, b2 = params["w2"], params["b2"]
    w3, b3 = params["w3"], params["b3"]

    # Pad batch to a multiple of the tile, then put batch on the lane axis.
    n_tiles = pl.cdiv(B, tile_b)
    B_pad = n_tiles * tile_b
    x_t = jnp.pad(x, ((0, B_pad - B), (0, 0))).T          # (4, B_pad)

    # Tiny, full-extent blocks for weights/biases; constant block index across
    # the batch grid so the pipeline does not re-DMA them every step.
    const = lambda a: pl.BlockSpec(a.shape, lambda i: (0,) * a.ndim)

    flops_per_sample = 2 * (4 * 16 + 16 * 8 + 8 * 2)
    weight_bytes = sum(int(a.size) * 4 for a in (w1, b1, w2, b2, w3, b3))
    cost = pl.CostEstimate(
        flops=B_pad * flops_per_sample,
        transcendentals=0,
        bytes_accessed=B_pad * (4 + 2) * 4 + weight_bytes,
    )

    out_t = pl.pallas_call(
        mlp_kernel,
        out_shape=jax.ShapeDtypeStruct((2, B_pad), jnp.float32),
        grid=(n_tiles,),
        in_specs=[
            pl.BlockSpec((4, tile_b), lambda i: (0, i)),   # x tile: lane-dense batch
            const(w1), const(b1),
            const(w2), const(b2),
            const(w3), const(b3),
        ],
        out_specs=pl.BlockSpec((2, tile_b), lambda i: (0, i)),  # lane-dense output
        compiler_params=pltpu.CompilerParams(
            dimension_semantics=("parallel",),   # megacore / v7x 2-TC sharding
            vmem_limit_bytes=16 * 1024 * 1024,   # tiles are tiny; safe on all parts
        ),
        cost_estimate=cost,
    )(x_t, w1, b1, w2, b2, w3, b3)

    # Back to the module's [B, 2] convention; drop the pad rows.
    return out_t.T[:B]


def init_params(key):
    """Deterministic params matching nn.Linear(4,16), (16,8), (8,2).

    Weights kept in PyTorch-native [out, in]; biases stored as [out, 1] so they
    broadcast over the lane (batch) axis inside the kernel.
    """
    ks = jax.random.split(key, 6)

    def linear(kw, kb, fan_in, fan_out):
        bound = 1.0 / jnp.sqrt(fan_in)
        w = jax.random.uniform(kw, (fan_out, fan_in), jnp.float32, -bound, bound)
        b = jax.random.uniform(kb, (fan_out, 1), jnp.float32, -bound, bound)
        return w, b

    w1, b1 = linear(ks[0], ks[1], 4, 16)
    w2, b2 = linear(ks[2], ks[3], 16, 8)
    w3, b3 = linear(ks[4], ks[5], 8, 2)
    return dict(w1=w1, b1=b1, w2=w2, b2=b2, w3=w3, b3=b3)


if __name__ == "__main__":
    key = jax.random.PRNGKey(0)
    k_params, k_x = jax.random.split(key)

    params = init_params(k_params)
    B = 256                                # small test batch; 2 grid steps at tile_b=128
    x = jax.random.normal(k_x, (B, 4), dtype=jnp.float32)

    out = simple_nn_forward(x, params, tile_b=128)
    jax.block_until_ready(out)

    # Pure-JAX reference of the same math (PyTorch-layout weights).
    h = jnp.maximum(x @ params["w1"].T + params["b1"].T, 0.0)
    h = jnp.maximum(h @ params["w2"].T + params["b2"].T, 0.0)
    ref = h @ params["w3"].T + params["b3"].T

    assert out.shape == (B, 2)
    assert jnp.allclose(out, ref, atol=1e-4, rtol=1e-4)

    print("KERNEL_OK")
</pallas_src>

<mosaic_0001>
module attributes {stable_mosaic.version = 11 : i64} {
  func.func @mlp_kernel(%arg0: i32, %arg1: memref<4x128xf32, #tpu.memory_space<vmem>>, %arg2: memref<16x4xf32, #tpu.memory_space<vmem>>, %arg3: memref<16x1xf32, #tpu.memory_space<vmem>>, %arg4: memref<8x16xf32, #tpu.memory_space<vmem>>, %arg5: memref<8x1xf32, #tpu.memory_space<vmem>>, %arg6: memref<2x8xf32, #tpu.memory_space<vmem>>, %arg7: memref<2x1xf32, #tpu.memory_space<vmem>>, %arg8: memref<2x128xf32, #tpu.memory_space<vmem>>) attributes {dimension_semantics = [#tpu.dimension_semantics<parallel>], iteration_bounds = array<i64: 2>, scalar_prefetch = 0 : i64, scratch_operands = 0 : i64, tpu.core_type = #tpu.core_type<tc>, window_params = [{transform_indices = @transform_0, window_bounds = array<i64: 4, 128>}, {pipeline_mode = #tpu.pipeline_mode<synchronous>, transform_indices = @transform_1, window_bounds = array<i64: 16, 4>}, {pipeline_mode = #tpu.pipeline_mode<synchronous>, transform_indices = @transform_2, window_bounds = array<i64: 16, 1>}, {pipeline_mode = #tpu.pipeline_mode<synchronous>, transform_indices = @transform_3, window_bounds = array<i64: 8, 16>}, {pipeline_mode = #tpu.pipeline_mode<synchronous>, transform_indices = @transform_4, window_bounds = array<i64: 8, 1>}, {pipeline_mode = #tpu.pipeline_mode<synchronous>, transform_indices = @transform_5, window_bounds = array<i64: 2, 8>}, {pipeline_mode = #tpu.pipeline_mode<synchronous>, transform_indices = @transform_6, window_bounds = array<i64: 2, 1>}, {transform_indices = @transform_7, window_bounds = array<i64: 2, 128>}]} {
    %c0 = arith.constant 0 : index
    %c0_0 = arith.constant 0 : index
    %0 = vector.load %arg1[%c0, %c0_0] : memref<4x128xf32, #tpu.memory_space<vmem>>, vector<4x128xf32>
    %c0_1 = arith.constant 0 : index
    %c0_2 = arith.constant 0 : index
    %1 = vector.load %arg2[%c0_1, %c0_2] : memref<16x4xf32, #tpu.memory_space<vmem>>, vector<16x4xf32>
    %cst = arith.constant dense<0.000000e+00> : vector<16x128xf32>
    %2 = tpu.matmul %1, %0, %cst {dimension_numbers = #tpu.dot_dimension_numbers<[1], [0], [0], [1], [0, 0, 1, 1], [], []>} : vector<16x4xf32>, vector<4x128xf32>, vector<16x128xf32> -> vector<16x128xf32>
    %c0_3 = arith.constant 0 : index
    %c0_4 = arith.constant 0 : index
    %3 = vector.load %arg3[%c0_3, %c0_4] : memref<16x1xf32, #tpu.memory_space<vmem>>, vector<16x1xf32>
    %4 = vector.broadcast %3 : vector<16x1xf32> to vector<16x128xf32>
    %5 = arith.addf %2, %4 : vector<16x128xf32>
    %cst_5 = arith.constant 0.000000e+00 : f32
    %6 = vector.broadcast %cst_5 : f32 to vector<16x128xf32>
    %7 = arith.maximumf %5, %6 : vector<16x128xf32>
    %c0_6 = arith.constant 0 : index
    %c0_7 = arith.constant 0 : index
    %8 = vector.load %arg4[%c0_6, %c0_7] : memref<8x16xf32, #tpu.memory_space<vmem>>, vector<8x16xf32>
    %cst_8 = arith.constant dense<0.000000e+00> : vector<8x128xf32>
    %9 = tpu.matmul %8, %7, %cst_8 {dimension_numbers = #tpu.dot_dimension_numbers<[1], [0], [0], [1], [0, 0, 1, 1], [], []>} : vector<8x16xf32>, vector<16x128xf32>, vector<8x128xf32> -> vector<8x128xf32>
    %c0_9 = arith.constant 0 : index
    %c0_10 = arith.constant 0 : index
    %10 = vector.load %arg5[%c0_9, %c0_10] : memref<8x1xf32, #tpu.memory_space<vmem>>, vector<8x1xf32>
    %11 = vector.broadcast %10 : vector<8x1xf32> to vector<8x128xf32>
    %12 = arith.addf %9, %11 : vector<8x128xf32>
    %cst_11 = arith.constant 0.000000e+00 : f32
    %13 = vector.broadcast %cst_11 : f32 to vector<8x128xf32>
    %14 = arith.maximumf %12, %13 : vector<8x128xf32>
    %c0_12 = arith.constant 0 : index
    %c0_13 = arith.constant 0 : index
    %15 = vector.load %arg6[%c0_12, %c0_13] : memref<2x8xf32, #tpu.memory_space<vmem>>, vector<2x8xf32>
    %cst_14 = arith.constant dense<0.000000e+00> : vector<2x128xf32>
    %16 = tpu.matmul %15, %14, %cst_14 {dimension_numbers = #tpu.dot_dimension_numbers<[1], [0], [0], [1], [0, 0, 1, 1], [], []>} : vector<2x8xf32>, vector<8x128xf32>, vector<2x128xf32> -> vector<2x128xf32>
    %c0_15 = arith.constant 0 : index
    %c0_16 = arith.constant 0 : index
    %17 = vector.load %arg7[%c0_15, %c0_16] : memref<2x1xf32, #tpu.memory_space<vmem>>, vector<2x1xf32>
    %18 = vector.broadcast %17 : vector<2x1xf32> to vector<2x128xf32>
    %19 = arith.addf %16, %18 : vector<2x128xf32>
    %c0_17 = arith.constant 0 : index
    %c0_18 = arith.constant 0 : index
    %20 = vector.load %arg8[%c0_17, %c0_18] : memref<2x128xf32, #tpu.memory_space<vmem>>, vector<2x128xf32>
    tpu.vector_store %arg8[%c0_17, %c0_18], %19 {strides = array<i32>} : memref<2x128xf32, #tpu.memory_space<vmem>>, vector<2x128xf32>,
    return
  }
  func.func @transform_0(%arg0: i32) -> (i32, i32) {
    %c0_i32 = arith.constant 0 : i32
    %c0_i32_0 = arith.constant 0 : i32
    return %c0_i32, %arg0 : i32, i32
  }
  func.func @transform_1(%arg0: i32) -> (i32, i32) {
    %c0_i32 = arith.constant 0 : i32
    %c0_i32_0 = arith.constant 0 : i32
    %c0_i32_1 = arith.constant 0 : i32
    return %c0_i32, %c0_i32_0 : i32, i32
  }
  func.func @transform_2(%arg0: i32) -> (i32, i32) {
    %c0_i32 = arith.constant 0 : i32
    %c0_i32_0 = arith.constant 0 : i32
    %c0_i32_1 = arith.constant 0 : i32
    return %c0_i32, %c0_i32_0 : i32, i32
  }
  func.func @transform_3(%arg0: i32) -> (i32, i32) {
    %c0_i32 = arith.constant 0 : i32
    %c0_i32_0 = arith.constant 0 : i32
    %c0_i32_1 = arith.constant 0 : i32
    return %c0_i32, %c0_i32_0 : i32, i32
  }
  func.func @transform_4(%arg0: i32) -> (i32, i32) {
    %c0_i32 = arith.constant 0 : i32
    %c0_i32_0 = arith.constant 0 : i32
    %c0_i32_1 = arith.constant 0 : i32
    return %c0_i32, %c0_i32_0 : i32, i32
  }
  func.func @transform_5(%arg0: i32) -> (i32, i32) {
    %c0_i32 = arith.constant 0 : i32
    %c0_i32_0 = arith.constant 0 : i32
    %c0_i32_1 = arith.constant 0 : i32
    return %c0_i32, %c0_i32_0 : i32, i32
  }
  func.func @transform_6(%arg0: i32) -> (i32, i32) {
    %c0_i32 = arith.constant 0 : i32
    %c0_i32_0 = arith.constant 0 : i32
    %c0_i32_1 = arith.constant 0 : i32
    return %c0_i32, %c0_i32_0 : i32, i32
  }
  func.func @transform_7(%arg0: i32) -> (i32, i32) {
    %c0_i32 = arith.constant 0 : i32
    %c0_i32_0 = arith.constant 0 : i32
    return %c0_i32, %arg0 : i32, i32
  }
}

</mosaic_0001>

<bundles_post_ra>
// kernel: tpu_custom_call.1
= control target key start
LH: loop header
LB: loop body
LE: loop exit
PB: predicated region body
PF: predicated region fallthrough
CT: control target
= control target key end

     0   :  { %12 = vsyncpa [#allocation3], 0  ;;  %s736_s0 = inlined_call_operand.vmem [shape: f32[4,256], index: 0, kind: input, shape index: {}]   ;;  %s737_s1 = inlined_call_operand.vmem [shape: f32[16,4], index: 1, kind: input, shape index: {}]   ;;  %s738_s2 = inlined_call_operand.vmem [shape: f32[16,1], index: 2, kind: input, shape index: {}]   ;;  %s739_s3 = inlined_call_operand.vmem [shape: f32[8,16], index: 3, kind: input, shape index: {}]   ;;  %s740_s4 = inlined_call_operand.vmem [shape: f32[8,1], index: 4, kind: input, shape index: {}]   ;;  %s741_s5 = inlined_call_operand.vmem [shape: f32[2,8], index: 5, kind: input, shape index: {}]   ;;  %s742_s6 = inlined_call_operand.vmem [shape: f32[2,1], index: 6, kind: input, shape index: {}]   ;;  %s743_s7 = inlined_call_operand.hbm [shape: f32[2,256], index: 7, kind: output, shape index: {}]  }
   0x1   :  { %14 = vsyncpa [#allocation3 + $0x1], 0  ;;  %s627_s24 = smov 0   ;;  %s629_s25 = smov 0  }
   0x2   :  { %s631_s26 = smov 0   ;;  %s633_s27 = smov 0  }
   0x3 LB: > { %s648_s28 = sadd.s32 4294967295, %s584_s27   ;;  %s464_s29 = sadd.s32 4294967294, %s584_s27   ;;  %s584_s27 = sphi %s633_s27, %s749_s27   ;;  %s580_s26 = sphi %s631_s26, %s748_s26   ;;  %s576_s25 = sphi %s629_s25, %s747_s25   ;;  %s572_s24 = sphi %s627_s24, %s746_s24  }
   0x4   : > { %s652_s30 = sadd.s32 1, %s584_s27   ;;  %s179_s8 = sadd.s32 1, %s580_s26 }
   0x5   : > { %s176_s9 = ssub.s32 %s584_s27, %s652_s30  ;;  %p189_p0 = scmp.ne.s32.totalorder %s580_s26, %s576_s25 }
   0x6   : > { %p177_p1 = scmp.eq.s32.totalorder %s176_s9, 0  ;;  %p190_p2 = scmp.eq.s32.totalorder %s648_s28, 1 }
   0x7   : > { %p195_p3 = scmp.ne.s32.totalorder %s576_s25, %s572_s24  ;;  %p196_p4 = scmp.eq.s32.totalorder %s464_s29, 1 }
   0x8   : > { %s663_s10 = scalar_select %p177_p1, %s580_s26, %s179_s8  }
   0x9   : > { %p665_p5 = por %p190_p2, %p189_p0  ;;  %p669_p6 = por %p196_p4, %p195_p3 }
   0xa   : > { %p467_p7 = scmp.ge.s32.totalorder %s584_s27, 1  ;;  %p239_p8 = scmp.lt.s32.totalorder %s584_s27, 3 }
   0xc   : > { %p240_p9 = pnand %p467_p7, %p239_p8 }
   0xd   : > { %p270_p10 = scmp.lt.s32.totalorder (!%p240_p9), %s648_s28, 1  ;;  %s267_s20 = sand.u32 (!%p240_p9), 1, %s576_s25  }
   0xe   : > { %243 = sbr.rel (%p240_p9) target bundleno = 432 (0x1b0), region = 48  ;;  %s468_s21 = sshll.u32 (!%p240_p9), %s267_s20, 1 }
   0xf   : > { %s476_s22 = sshll.u32 (!%p240_p9), %s648_s28, 1  ;;  %s269_s9 = scalar_lea.vmem (!%p240_p9), [#allocation2], %s468_s21 }
  0x10   : > { %s400_s8 = scalar_lea.hbm (!%p240_p9), %s743_s7, %s476_s22  ;;  %s402_s13 = sshll.u32 (!%p240_p9), %s269_s9, 4  ;;  %s403_s13 = int_to_ptr.vmem [resolvable:$true] %s402_s13 }
  0x11   : > { %s404_s14 = sshll.u32 (!%p240_p9), %s400_s8, 4  ;;  %s405_s14 = int_to_ptr.hbm [resolvable:$true] %s404_s14 }
  0x13   : > { %v586_v0 = vmov 0   ;;  %v278_v1 = vld [vmem:[%s738_s2 + $0x8] sm:$0xff]  ;;  %s271_s15 = scalar_select %p270_p10, %s648_s28, 1  ;;  %vm296_vm0 = vcmask 1043456   ;;  %v275_v2 = vld [vmem:[%s737_s1] sm:$0xff]  ;;  %vm289_vm1 = vcmask 31744  }
  0x14   : > { %520 = vset.pattern.permute.xlu0 %v586_v0  ;;  %521 = vset.pattern.permute.xlu1 %v586_v0  ;;  %v276_v3 = vld [vmem:[%s737_s1 + $0x8] sm:$0xff]  ;;  %v277_v5 = vld [vmem:[%s738_s2] sm:$0xff]  ;;  %vm332_vm2 = vcmask 130048   ;;  %vm364_vm3 = vcmask 64512  }
  0x15   : > { %286 = vperm.xlu0 %520, %v278_v1   ;;  %s469_s16 = sshll.u32 %s271_s15, 2  ;;  %v326_v6 = vld [vmem:[%s740_s4] sm:$0xff]  ;;  %s390_s15 = scalar_lea.sflag [#allocation3], %s267_s20 }
  0x16   : > { %s273_s19 = scalar_lea.vmem %s736_s0, %s469_s16  ;;  %329 = vperm.xlu1 %521, %v326_v6   ;;  %v358_v7 = vld [vmem:[%s742_s6] sm:$0x3]  ;;  %s536_s16 = sshra.s32 %s405_s14, 4  ;;  %s537_s16 = int_to_ptr.hbm [resolvable:$true] %s536_s16 }
  0x17   : > { %v274_v4 = vld [vmem:[%s273_s19] sm:$0xf]  ;;  %s538_s17 = scalar_lea.hbm %s537_s16, 2  ;;  %s542_s19 = scalar_lea.hbm %s743_s7, 4 }
  0x18   : > { %470 = vmatpush.msk.msra.mxu0 %vm296_vm0, %v274_v4  ;;  %479 = vmatpush.msk.msra.mxu3 %vm296_vm0, %v274_v4  ;;  %v325_v16 = vld [vmem:[%s739_s3] sm:$0xff]  ;;  %p539_p11 = scmp.ne.s32.totalorder %s537_s16, %s538_s17  ;;  %p543_p0 = scmp.lt.s32.totalorder %s537_s16, %s743_s7 }
  0x19   : > { %471 = vmatmul.msk.f32.vlgmr.msra.gmra.mxu0 %vm289_vm1, %v275_v2  ;;  %472 = vmatmul.msk.f32.vlgmr.msra.gmra.mxu3 %vm289_vm1, %v276_v3  ;;  %v357_v21 = vld [vmem:[%s741_s5] sm:$0x3]  ;;  %p544_p1 = scmp.lt.s32.totalorder %s542_s19, %s538_s17 }
  0x1a   : > { %p540_p12 = pnand %p539_p11, %p665_p5 }
  0x1b   : > { %p545_p2 = por %p544_p1, %p543_p0 }
  0x1c   : > { %p541_p13 = pneg %p540_p12 }
  0x1d   : > { %281 = vperm.xlu0 %520, %v277_v5  }
  0x1e   : > { %361 = vperm.xlu1 %521, %v358_v7   ;;  %p546_p3 = pnand %p545_p2, %p541_p13 }
  0x87   : > { %v287_v8 = vpop.permute.xlu0 %286 }
  0x88   : > { %v330_v17 = vpop.permute.xlu1 %329 }
  0x8f   : > { %v282_v9 = vpop.permute.xlu0 %281 }
  0x90   : > { %v362_v22 = vpop.permute.xlu1 %361 }
  0x96   : > { %v317_v10 = vpop.f32.mrf.mxu0 }
  0x97   : > { %v318_v12 = vadd.f32 %v317_v10, %v282_v9 }
  0x99   : > { %v323_v15 = vmax.f32 %v318_v12, 0.0 }
  0x9c   : > { %v320_v11 = vpop.f32.mrf.mxu3 }
  0x9d   : > { %v321_v13 = vadd.f32 %v320_v11, %v287_v8 }
  0x9f   : > { %v324_v14 = vmax.f32 %v321_v13, 0.0 }
  0xa1   : > { %350 = vmatpush.msra.mxu1 %v324_v14 }
  0xa3   : > { %351 = vmatpush.msra.mxu1 %v323_v15 }
  0xa4   : > { %473 = vmatmul.msk.f32.vlgmr.msra.gmra.mxu1 %vm332_vm2, %v325_v16 }
 0x121   : > { %v353_v18 = vpop.f32.mrf.mxu1 }
 0x122   : > { %v354_v19 = vadd.f32 %v353_v18, %v330_v17 }
 0x124   : > { %v356_v20 = vmax.f32 %v354_v19, 0.0 }
 0x126   : > { %383 = vmatpush.msra.mxu2 %v356_v20 }
 0x127   : > { %474 = vmatmul.msk.f32.vlgmr.msra.gmra.mxu2 %vm364_vm3, %v357_v21 }
 0x1aa   : > { %v385_v23 = vpop.f32.mrf.mxu2 }
 0x1ab   : > { %v386_v24 = vadd.f32 %v385_v23, %v362_v22 }
 0x1ad   : > { %388 = vst [vmem:[%s269_s9] sm:$0x3] %v386_v24 }
 0x1ae   : > { %549 = shalt.err (!%p546_p3)
}
 0x1af   : > { %480 = dma.vmem_to_hbm [thread:$0]  (%p665_p5), %s403_s13, 32, %s405_s14, %s390_s15  }
 0x1b0 PF: > { %p486_p4 = scmp.ge.s32.totalorder %s584_s27, 2  ;;  %s416_s20 = sand.u32 1, %s572_s24  }
 0x1b1   : > { %s417_s23 = scalar_lea.sflag [#allocation3], %s416_s20 }
 0x1b2   : > { %p483_p7 = pnand %p486_p4, %p669_p6 }
 0x1b4   : > { %p484_p8 = pneg %p483_p7 }
 0x1b6   : > { %567 = dma.done.wait (%p484_p8), %s417_s23, 32  }
 0x1b7   : > { %569 = vsyncadd (%p484_p8), %s417_s23, 4294967264  ;;  %p17_p9 = scmp.ge.s32.totalorder %s652_s30, 4   ;;  %s746_s24 = smov %s576_s25 }
 0x1b8   : > { %s747_s25 = smov %s580_s26  ;;  %s748_s26 = smov %s663_s10 }
 0x1b9   : > { %s749_s27 = smov %s652_s30  ;;  %19 = sbr.rel (!%p17_p9) target bundleno = 3 (0x3), region = 83 }
 0x1be   :  { %423 = vsyncpa [#allocation3], 1 }
 0x1bf   :  { %425 = vsyncpa [#allocation3 + $0x1], 1 }

</bundles_post_ra>
